<compile_context>
chip_gen: v7x
topology: tpu7x:2x2x1
jax: 0.10.0
libtpu: 0.0.40
codegen_flags: <defaults>
</compile_context>

<pallas_src>
import functools
import math

import jax
import jax.numpy as jnp
from jax import lax
from jax.experimental import pallas as pl
from jax.experimental.pallas import tpu as pltpu


def _round_up(x, m):
    return ((x + m - 1) // m) * m


def _distribution_kernel(x_ref, w_ref, o_ref, *, d_out):
    """One grid step: B input rows -> softmax(x @ W.T, axis=-1).

    x_ref: (B, d_in)           input rows
    w_ref: (d_out_pad, d_in)   PyTorch Linear weight layout (out, in)
    o_ref: (B, d_out_pad)      row-softmax of the logits
    """
    # Bias-free linear: contract x's last dim with w's last dim (NT matmul on
    # the MXU) -- no wrapper-side transpose, f32 accumulation.
    s = lax.dot_general(
        x_ref[...], w_ref[...],
        dimension_numbers=(((1,), (1,)), ((), ())),
        preferred_element_type=jnp.float32)

    d_out_pad = s.shape[-1]
    if d_out_pad != d_out:
        # Lane-padding columns get -inf logits => exactly 0 probability, so
        # the real columns' softmax is unchanged.
        col = lax.broadcasted_iota(jnp.int32, s.shape, 1)
        s = jnp.where(col < d_out, s, jnp.float32(-1e30))

    # Numerically-stable softmax over output features (dim=1 of the module).
    s = s - jnp.max(s, axis=-1, keepdims=True)
    e = jnp.exp(s)
    denom = jnp.sum(e, axis=-1, keepdims=True)
    # Exact divide (NOT approx reciprocal): rows sum to 1 to f32 precision.
    o_ref[...] = (e / denom).astype(o_ref.dtype)


def distribution_layer(inps, weight, *, block_rows=1024, use_bf16=False):
    """softmax(inps @ weight.T, axis=1) == DistributionLayer.forward.

    inps:   (N, d_input)            float32
    weight: (d_output, d_input)     nn.Linear weight (PyTorch layout), no bias
    returns (N, d_output)           float32
    """
    n, d_in = inps.shape
    d_out, d_in_w = weight.shape
    assert d_in == d_in_w, "weight / input feature-dim mismatch"

    compute_dtype = jnp.bfloat16 if use_bf16 else jnp.float32
    x = inps.astype(compute_dtype)
    w = weight.astype(compute_dtype)            # keep (d_out, d_in): no HBM transpose pass

    # Lane-dense output: pad output features up to a multiple of 128; padded
    # logits are masked to -inf in-kernel.
    d_out_pad = _round_up(d_out, 128)
    if d_out_pad != d_out:
        w = jnp.pad(w, ((0, d_out_pad - d_out), (0, 0)))

    # Row block: large (amortize ~0.35 us per-step overhead), multiple of 8,
    # never larger than the row count rounded up to a sublane.
    b = max(8, min(_round_up(block_rows, 8), _round_up(n, 8)))
    # Keep the ("parallel",) grid >= 2 steps when there is enough work, so
    # both v7x TensorCores get row blocks.
    if n >= 16 and pl.cdiv(n, b) < 2:
        b = _round_up(pl.cdiv(n, 2), 8)

    # Explicit VMEM budget (v7x: 64 MiB physical / 32 MiB scoped default).
    itemsize = jnp.dtype(compute_dtype).itemsize

    def vmem_need(b_):
        return (2 * b_ * d_in * itemsize            # double-buffered x blocks
                + 2 * d_out_pad * d_in * itemsize   # resident weight (2 bufs reserved)
                + 2 * b_ * d_out_pad * 4            # double-buffered out blocks
                + 4 * b_ * d_out_pad * 4)           # softmax temporaries headroom

    VMEM_BUDGET = 48 << 20                          # comfortable on v7x's 64 MiB
    while b > 8 and vmem_need(b) > VMEM_BUDGET:
        b = max(8, _round_up(b // 2, 8))
    vmem_limit = int(min(100 << 20, max(2 * vmem_need(b), 32 << 20)))

    grid = (pl.cdiv(n, b),)

    cost = pl.CostEstimate(
        flops=2 * n * d_in * d_out_pad + 4 * n * d_out_pad,
        transcendentals=n * d_out_pad,
        bytes_accessed=itemsize * (n * d_in + d_out_pad * d_in) + 4 * n * d_out_pad,
    )

    kernel = functools.partial(_distribution_kernel, d_out=d_out)

    out = pl.pallas_call(
        kernel,
        out_shape=jax.ShapeDtypeStruct((n, d_out_pad), jnp.float32),
        grid_spec=pltpu.PrefetchScalarGridSpec(
            num_scalar_prefetch=0,
            grid=grid,
            in_specs=[
                pl.BlockSpec((b, d_in), lambda i: (i, 0)),          # x row blocks
                pl.BlockSpec((d_out_pad, d_in), lambda i: (0, 0)),  # W, grid-invariant
            ],
            out_specs=pl.BlockSpec((b, d_out_pad), lambda i: (i, 0)),
        ),
        compiler_params=pltpu.CompilerParams(
            dimension_semantics=("parallel",),
            vmem_limit_bytes=vmem_limit),
        cost_estimate=cost,
    )(x, w)

    # No row padding / row slice: Pallas masks the partial boundary block.
    if d_out_pad != d_out:
        out = out[:, :d_out]
    return out


def _reference(inps, weight):
    return jax.nn.softmax(inps @ weight.T, axis=1)


if __name__ == "__main__":
    # Shapes consistent with the module: N rows of d_input features ->
    # distribution over d_output.
    n, d_in, d_out = 8, 32, 128

    key = jax.random.PRNGKey(0)
    k_x, k_w, k_x2, k_w2 = jax.random.split(key, 4)

    # nn.Linear(d_input, d_output, bias=False) with xavier_uniform_ weight.
    xav = math.sqrt(6.0 / (d_in + d_out))
    weight = jax.random.uniform(k_w, (d_out, d_in), minval=-xav, maxval=xav,
                                dtype=jnp.float32)
    inps = jax.random.normal(k_x, (n, d_in), dtype=jnp.float32)

    out = jax.block_until_ready(distribution_layer(inps, weight))
    ref = _reference(inps, weight)
    assert out.shape == (n, d_out)
    assert jnp.allclose(out, ref, atol=2e-3, rtol=2e-3), "mismatch vs reference"
    assert jnp.allclose(jnp.sum(out, axis=1), 1.0, atol=1e-4), "rows not normalized"

    # Second check: non-128-aligned d_out and non-divisible N exercise the
    # lane-padding mask and the Pallas boundary-block path.
    n2, d_out2 = 20, 96
    xav2 = math.sqrt(6.0 / (d_in + d_out2))
    weight2 = jax.random.uniform(k_w2, (d_out2, d_in), minval=-xav2, maxval=xav2,
                                 dtype=jnp.float32)
    inps2 = jax.random.normal(k_x2, (n2, d_in), dtype=jnp.float32)

    out2 = jax.block_until_ready(distribution_layer(inps2, weight2, block_rows=8))
    ref2 = _reference(inps2, weight2)
    assert out2.shape == (n2, d_out2)
    assert jnp.allclose(out2, ref2, atol=2e-3, rtol=2e-3), "mismatch vs reference (padded)"
    assert jnp.allclose(jnp.sum(out2, axis=1), 1.0, atol=1e-4), "rows not normalized (padded)"

    print("KERNEL_OK")
</pallas_src>

<mosaic_0001>
module attributes {stable_mosaic.version = 11 : i64} {
  func.func @_distribution_kernel(%arg0: i32, %arg1: memref<8x32xf32, #tpu.memory_space<vmem>>, %arg2: memref<128x32xf32, #tpu.memory_space<vmem>>, %arg3: memref<8x128xf32, #tpu.memory_space<vmem>>) attributes {dimension_semantics = [#tpu.dimension_semantics<parallel>], iteration_bounds = array<i64: 1>, scalar_prefetch = 0 : i64, scratch_operands = 0 : i64, tpu.core_type = #tpu.core_type<tc>, window_params = [{transform_indices = @transform_0, window_bounds = array<i64: 8, 32>}, {pipeline_mode = #tpu.pipeline_mode<synchronous>, transform_indices = @transform_1, window_bounds = array<i64: 128, 32>}, {transform_indices = @transform_2, window_bounds = array<i64: 8, 128>}]} {
    %c0 = arith.constant 0 : index
    %c0_0 = arith.constant 0 : index
    %0 = vector.load %arg1[%c0, %c0_0] : memref<8x32xf32, #tpu.memory_space<vmem>>, vector<8x32xf32>
    %c0_1 = arith.constant 0 : index
    %c0_2 = arith.constant 0 : index
    %1 = vector.load %arg2[%c0_1, %c0_2] : memref<128x32xf32, #tpu.memory_space<vmem>>, vector<128x32xf32>
    %cst = arith.constant dense<0.000000e+00> : vector<8x128xf32>
    %2 = tpu.matmul %0, %1, %cst {dimension_numbers = #tpu.dot_dimension_numbers<[1], [1], [0], [0], [0, 0, 1, 0], [], []>} : vector<8x32xf32>, vector<128x32xf32>, vector<8x128xf32> -> vector<8x128xf32>
    %cst_3 = arith.constant dense<0xFF800000> : vector<8xf32>
    %3 = vector.multi_reduction <maximumf>, %2, %cst_3 [1] : vector<8x128xf32> to vector<8xf32>
    %4 = vector.shape_cast %3 : vector<8xf32> to vector<8x1xf32>
    %5 = vector.broadcast %4 : vector<8x1xf32> to vector<8x128xf32>
    %6 = arith.subf %2, %5 : vector<8x128xf32>
    %7 = math.exp %6 : vector<8x128xf32>
    %cst_4 = arith.constant dense<0.000000e+00> : vector<8xf32>
    %8 = vector.multi_reduction <add>, %7, %cst_4 [1] : vector<8x128xf32> to vector<8xf32>
    %9 = vector.shape_cast %8 : vector<8xf32> to vector<8x1xf32>
    %10 = vector.broadcast %9 : vector<8x1xf32> to vector<8x128xf32>
    %11 = arith.divf %7, %10 : vector<8x128xf32>
    %c0_5 = arith.constant 0 : index
    %c0_6 = arith.constant 0 : index
    %12 = vector.load %arg3[%c0_5, %c0_6] : memref<8x128xf32, #tpu.memory_space<vmem>>, vector<8x128xf32>
    tpu.vector_store %arg3[%c0_5, %c0_6], %11 {strides = array<i32>} : memref<8x128xf32, #tpu.memory_space<vmem>>, vector<8x128xf32>,
    return
  }
  func.func @transform_0(%arg0: i32) -> (i32, i32) {
    %c0_i32 = arith.constant 0 : i32
    %c0_i32_0 = arith.constant 0 : i32
    return %arg0, %c0_i32 : i32, i32
  }
  func.func @transform_1(%arg0: i32) -> (i32, i32) {
    %c0_i32 = arith.constant 0 : i32
    %c0_i32_0 = arith.constant 0 : i32
    %c0_i32_1 = arith.constant 0 : i32
    return %c0_i32, %c0_i32_0 : i32, i32
  }
  func.func @transform_2(%arg0: i32) -> (i32, i32) {
    %c0_i32 = arith.constant 0 : i32
    %c0_i32_0 = arith.constant 0 : i32
    return %arg0, %c0_i32 : i32, i32
  }
}

</mosaic_0001>

<bundles_post_ra>
// kernel: tpu_custom_call.1
= control target key start
LH: loop header
LB: loop body
LE: loop exit
PB: predicated region body
PF: predicated region fallthrough
CT: control target
= control target key end

     0   :  { %vm29_vm0 = vcmask 261120   ;;  %v308_v2 = vmov 0.0|0.0   ;;  %vm309_vm2 = vmmov 0   ;;  %v310_v5 = vmov 0.0   ;;  %s413_s0 = inlined_call_operand.vmem [shape: f32[8,32], index: 0, kind: input, shape index: {}]   ;;  %s414_s1 = inlined_call_operand.vmem [shape: f32[128,32], index: 1, kind: input, shape index: {}]   ;;  %s415_s2 = inlined_call_operand.hbm [shape: f32[8,128], index: 2, kind: output, shape index: {}]  }
   0x1   :  { %v13_v0 = vld [vmem:[%s414_s1] sm:$0xff]  ;;  %v14_v1 = vld [vmem:[%s414_s1 + $0x8] sm:$0xff]  ;;  %244 = vmatprep.subr.bf16.mxu0 %v308_v2  ;;  %vm335_vm1 = vmpackc.low %vm29_vm0, %vm29_vm0  ;;  %241 = vmatprep.mubr.msk.f32.mxu0 %vm309_vm2, %v310_v5 }
   0x2   :  { %v245_v3 = vpack.c.bf16 %v14_v1, %v13_v0  ;;  %v15_v6 = vld [vmem:[%s414_s1 + $0x10] sm:$0xff]  ;;  %v16_v7 = vld [vmem:[%s414_s1 + $0x18] sm:$0xff] }
   0x4   :  { %247 = vmatpush3.bf16.xpose.msk.msra.mxu0 %vm335_vm1, %v245_v3 }
   0x5   :  { %248 = vmatprep.subr.bf16.mxu0 %v308_v2 }
   0x6   :  { %7 = vsyncpa [#allocation3], 0  ;;  %v249_v8 = vpack.c.bf16 %v16_v7, %v15_v6  ;;  %v17_v9 = vld [vmem:[%s414_s1 + $0x20] sm:$0xff]  ;;  %v18_v10 = vld [vmem:[%s414_s1 + $0x28] sm:$0xff] }
   0x7   :  { %v253_v11 = vpack.c.bf16 %v18_v10, %v17_v9  ;;  %v19_v12 = vld [vmem:[%s414_s1 + $0x30] sm:$0xff]  ;;  %v20_v13 = vld [vmem:[%s414_s1 + $0x38] sm:$0xff]  ;;  %v21_v15 = vld [vmem:[%s414_s1 + $0x40] sm:$0xff] }
   0x8   :  { %v257_v14 = vpack.c.bf16 %v20_v13, %v19_v12  ;;  %v22_v16 = vld [vmem:[%s414_s1 + $0x48] sm:$0xff]  ;;  %v23_v18 = vld [vmem:[%s414_s1 + $0x50] sm:$0xff]  ;;  %v24_v19 = vld [vmem:[%s414_s1 + $0x58] sm:$0xff] }
   0x9   :  { %v261_v17 = vpack.c.bf16 %v22_v16, %v21_v15  ;;  %v265_v20 = vpack.c.bf16 %v24_v19, %v23_v18  ;;  %v25_v21 = vld [vmem:[%s414_s1 + $0x60] sm:$0xff]  ;;  %v26_v22 = vld [vmem:[%s414_s1 + $0x68] sm:$0xff]  ;;  %v27_v24 = vld [vmem:[%s414_s1 + $0x70] sm:$0xff] }
   0xa   :  { %v269_v23 = vpack.c.bf16 %v26_v22, %v25_v21  ;;  %v28_v25 = vld [vmem:[%s414_s1 + $0x78] sm:$0xff]  ;;  %v12_v27 = vld [vmem:[%s413_s0] sm:$0xff]  ;;  %s311_s1 = smov [#allocation2]  }
   0xb   :  { %v273_v26 = vpack.c.bf16 %v28_v25, %v27_v24  ;;  %s167_s15 = sshll.u32 %s311_s1, 4  ;;  %s168_s15 = int_to_ptr.vmem [resolvable:$true] %s167_s15 }
   0xc   :  { %251 = vmatpush3.bf16.xpose.msk.msra.mxu0 %vm335_vm1, %v249_v8  ;;  %s284_s0 = scalar_lea.vmem %s168_s15, 128  ;;  %p289_p1 = scmp.lt.s32.totalorder %s168_s15, %s168_s15 }
   0xd   :  { %252 = vmatprep.subr.bf16.mxu0 %v308_v2  ;;  %p285_p0 = scmp.ne.s32.totalorder %s168_s15, %s284_s0  ;;  %p290_p2 = scmp.lt.s32.totalorder %s284_s0, %s284_s0 }
   0xf   :  { %p291_p3 = por %p290_p2, %p289_p1 }
  0x11   :  { %p292_p4 = pnand %p291_p3, %p285_p0 }
  0x14   :  { %255 = vmatpush3.bf16.xpose.msk.msra.mxu0 %vm335_vm1, %v253_v11 }
  0x15   :  { %256 = vmatprep.subr.bf16.mxu0 %v308_v2 }
  0x1c   :  { %259 = vmatpush3.bf16.xpose.msk.msra.mxu0 %vm335_vm1, %v257_v14 }
  0x1d   :  { %260 = vmatprep.subr.bf16.mxu0 %v308_v2 }
  0x24   :  { %263 = vmatpush3.bf16.xpose.msk.msra.mxu0 %vm335_vm1, %v261_v17 }
  0x25   :  { %264 = vmatprep.subr.bf16.mxu0 %v308_v2 }
  0x2c   :  { %267 = vmatpush3.bf16.xpose.msk.msra.mxu0 %vm335_vm1, %v265_v20 }
  0x2d   :  { %268 = vmatprep.subr.bf16.mxu0 %v308_v2 }
  0x34   :  { %271 = vmatpush3.bf16.xpose.msk.msra.mxu0 %vm335_vm1, %v269_v23 }
  0x35   :  { %272 = vmatprep.subr.bf16.mxu0 %v308_v2 }
  0x3c   :  { %275 = vmatpush3.bf16.xpose.msk.msra.mxu0 %vm335_vm1, %v273_v26 }
  0x43   :  { %242 = vmatmul.mubr.msk.f32.vlgmr.msra.gmra.mrb[0].mxu0 %vm29_vm0, %v12_v27 }
 0x116   :  { %v147_v28 = vpop.f32.mrb[0].mxu0 }
 0x117   :  { %151 = vmax.xlane.f32.xlu0 %v147_v28  ;;  %v243_v29 = vpop.f32.mrb[1].mxu0 }
 0x1a4   :  { %v152_v30 = vpop.xlane.xlu0 %151 }
 0x1a5   :  { %v153_v31 = vsub.f32 %v147_v28, %v152_v30 }
 0x1a7   :  { %v154_v32 = vmul.f32 1.442695, %v153_v31 }
 0x1a9   :  { %280 = vpow2.f32 %v154_v32 }
 0x1b3   :  { %v281_v33 = vpop.eup %280 }
 0x1b4   :  { %156 = vadd.xlane.f32.xlu0 %v281_v33 }
 0x241   :  { %v157_v34 = vpop.xlane.xlu0 %156 }
 0x242   :  { %282 = vrcp.f32 %v157_v34 }
 0x24c   :  { %v283_v35 = vpop.eup %282 }
 0x24d   :  { %v159_v36 = vmul.f32 %v283_v35, %v281_v33 }
 0x24f   :  { %160 = vst [vmem:[#allocation2] sm:$0xff] %v159_v36 }
 0x250   :  { %295 = shalt.err (!%p292_p4)
}
 0x251   :  { %s296_s18 = scalar_lea.hbm %s415_s2, 128 }
 0x252   :  { %p297_p5 = scmp.ne.s32.totalorder %s415_s2, %s296_s18  ;;  %p300_p6 = scmp.lt.u32.totalorder %s296_s18, %s415_s2 }
 0x254   :  { %p302_p7 = pnand %p300_p6, %p297_p5 }
 0x256   :  { %305 = shalt.err (!%p302_p7)
}
 0x257   :  { %170 = dma.vmem_to_hbm [thread:$0]  %s168_s15, 128, %s415_s2, [#allocation3]  }
 0x258   :  { %306 = dma.done.wait [#allocation3], 128  }
 0x259   :  { %307 = vsyncadd [#allocation3], 4294967168 }
 0x25a   :  { %174 = vsyncpa [#allocation3], 1 }

</bundles_post_ra>
